<compile_context>
chip_gen: v5e
topology: v5e:2x2
jax: 0.10.0
libtpu: 0.0.40
codegen_flags: <defaults>
</compile_context>

<pallas_src>
import jax
import jax.numpy as jnp
from jax.experimental import pallas as pl
from jax.experimental.pallas import tpu as pltpu

# ---- constants from MountainCarDx.__init__ ----
MIN_POSITION = -1.2
MAX_POSITION = 0.6
MAX_SPEED = 0.07
FORCE = 0.001
GRAVITY = 0.0025

_LANE = 128       # TPU lane width
_MAX_TB = 16384   # max batch rows (lanes) per block; (2+1+2)*4B * 2 bufs * 16384 ~ 0.6 MiB VMEM


def _mountaincar_kernel(x_ref, u_ref, out_ref):
    # x_ref: (2, TB)   u_ref: (1, TB)   out_ref: (2, TB)
    # Batch on the lane axis; state components are sublane rows (cheap slices).
    position = x_ref[0:1, :].astype(jnp.float32)   # (1, TB)
    velocity = x_ref[1:2, :].astype(jnp.float32)   # (1, TB)
    u = u_ref[...].astype(jnp.float32)             # (1, TB)

    velocity = velocity + u * FORCE + jnp.cos(3.0 * position) * (-GRAVITY)
    velocity = jnp.clip(velocity, -MAX_SPEED, MAX_SPEED)
    position = jnp.clip(position + velocity, MIN_POSITION, MAX_POSITION)

    # Two direct sublane stores -- no concatenate / cross-lane shuffle.
    out_ref[0:1, :] = position.astype(out_ref.dtype)
    out_ref[1:2, :] = velocity.astype(out_ref.dtype)


def mountaincar_dx(x, u):
    """Forward dynamics. x: (B, 2) or (2,); u: (B, 1) or (1,)."""
    squeeze = x.ndim == 1
    if squeeze:
        x = x[None, :]
        u = u[None, :]
    B = x.shape[0]
    # NOTE: for tiny B the pure-JAX path / fusing into the surrounding rollout
    # would beat the pallas_call launch overhead; kept on the kernel path here
    # so the kernel is always exercised.

    # Lane-dense layout: batch -> lane axis. Pad batch to a multiple of the
    # block width so every block is full (no ragged tiles, unmasked stores).
    tb = min(_MAX_TB, pl.cdiv(B, _LANE) * _LANE)
    bp = pl.cdiv(B, tb) * tb
    xt = jnp.pad(x.T, ((0, 0), (0, bp - B)))   # (2, Bp)
    ut = jnp.pad(u.T, ((0, 0), (0, bp - B)))   # (1, Bp)

    out_t = pl.pallas_call(
        _mountaincar_kernel,
        out_shape=jax.ShapeDtypeStruct((2, bp), x.dtype),
        grid=(bp // tb,),
        in_specs=[
            pl.BlockSpec((2, tb), lambda i: (0, i)),
            pl.BlockSpec((1, tb), lambda i: (0, i)),
        ],
        out_specs=pl.BlockSpec((2, tb), lambda i: (0, i)),
        # x tile and output tile have identical shape/dtype; reuse the HBM buffer.
        input_output_aliases={0: 0},
        compiler_params=pltpu.CompilerParams(
            dimension_semantics=("parallel",),  # megacore-shard batch on v7x
        ),
    )(xt, ut)

    out = out_t[:, :B].T    # back to (B, 2)
    if squeeze:
        out = out[0]
    return out


def _reference(x, u):
    # Pure-JAX reference mirroring the PyTorch forward.
    position = x[:, 0]
    velocity = x[:, 1]
    velocity = velocity + (u * FORCE)[:, 0] + jnp.cos(3.0 * position) * (-GRAVITY)
    velocity = jnp.clip(velocity, -MAX_SPEED, MAX_SPEED)
    position = jnp.clip(position + velocity, MIN_POSITION, MAX_POSITION)
    return jnp.stack([position, velocity], axis=1)


if __name__ == "__main__":
    key = jax.random.PRNGKey(0)
    kx, kv, ku = jax.random.split(key, 3)
    B = 8
    pos = jax.random.uniform(kx, (B, 1), minval=MIN_POSITION, maxval=MAX_POSITION)
    vel = jax.random.uniform(kv, (B, 1), minval=-MAX_SPEED, maxval=MAX_SPEED)
    x = jnp.concatenate([pos, vel], axis=1).astype(jnp.float32)   # (8, 2)
    u = jax.random.uniform(ku, (B, 1), minval=-1.0, maxval=1.0).astype(jnp.float32)  # (8, 1)

    out = jax.block_until_ready(mountaincar_dx(x, u))
    ref = _reference(x, u)
    assert out.shape == (B, 2)
    assert jnp.allclose(out, ref, atol=1e-6, rtol=1e-6), (out, ref)

    # Non-multiple-of-128 batch to exercise the padded, tiled path.
    B2 = 300
    k1, k2, k3 = jax.random.split(jax.random.PRNGKey(1), 3)
    pos2 = jax.random.uniform(k1, (B2, 1), minval=MIN_POSITION, maxval=MAX_POSITION)
    vel2 = jax.random.uniform(k2, (B2, 1), minval=-MAX_SPEED, maxval=MAX_SPEED)
    x2 = jnp.concatenate([pos2, vel2], axis=1).astype(jnp.float32)
    u2 = jax.random.uniform(k3, (B2, 1), minval=-1.0, maxval=1.0).astype(jnp.float32)
    out2 = jax.block_until_ready(mountaincar_dx(x2, u2))
    assert jnp.allclose(out2, _reference(x2, u2), atol=1e-6, rtol=1e-6)

    # 1-D (squeeze) path, as in the PyTorch module.
    out1d = jax.block_until_ready(mountaincar_dx(x[0], u[0]))
    assert out1d.shape == (2,)
    assert jnp.allclose(out1d, ref[0], atol=1e-6, rtol=1e-6)

    print("KERNEL_OK")
</pallas_src>

<mosaic_0001>
module attributes {stable_mosaic.version = 11 : i64} {
  func.func @_mountaincar_kernel(%arg0: i32, %arg1: memref<2x128xf32, #tpu.memory_space<vmem>>, %arg2: memref<1x128xf32, #tpu.memory_space<vmem>>, %arg3: memref<2x128xf32, #tpu.memory_space<vmem>>) attributes {dimension_semantics = [#tpu.dimension_semantics<parallel>], iteration_bounds = array<i64: 1>, scalar_prefetch = 0 : i64, scratch_operands = 0 : i64, tpu.core_type = #tpu.core_type<tc>, window_params = [{transform_indices = @transform_0, window_bounds = array<i64: 2, 128>}, {transform_indices = @transform_1, window_bounds = array<i64: 1, 128>}, {transform_indices = @transform_2, window_bounds = array<i64: 2, 128>}]} {
    %c0 = arith.constant 0 : index
    %c0_0 = arith.constant 0 : index
    %0 = vector.load %arg1[%c0, %c0_0] : memref<2x128xf32, #tpu.memory_space<vmem>>, vector<1x128xf32>
    %c1 = arith.constant 1 : index
    %c0_1 = arith.constant 0 : index
    %1 = vector.load %arg1[%c1, %c0_1] : memref<2x128xf32, #tpu.memory_space<vmem>>, vector<1x128xf32>
    %c0_2 = arith.constant 0 : index
    %c0_3 = arith.constant 0 : index
    %2 = vector.load %arg2[%c0_2, %c0_3] : memref<1x128xf32, #tpu.memory_space<vmem>>, vector<1x128xf32>
    %cst = arith.constant 1.000000e-03 : f32
    %3 = vector.broadcast %cst : f32 to vector<1x128xf32>
    %4 = arith.mulf %2, %3 : vector<1x128xf32>
    %5 = arith.addf %1, %4 : vector<1x128xf32>
    %cst_4 = arith.constant 3.000000e+00 : f32
    %6 = vector.broadcast %cst_4 : f32 to vector<1x128xf32>
    %7 = arith.mulf %6, %0 : vector<1x128xf32>
    %8 = math.cos %7 : vector<1x128xf32>
    %cst_5 = arith.constant -2.500000e-03 : f32
    %9 = vector.broadcast %cst_5 : f32 to vector<1x128xf32>
    %10 = arith.mulf %8, %9 : vector<1x128xf32>
    %11 = arith.addf %5, %10 : vector<1x128xf32>
    %cst_6 = arith.constant -7.000000e-02 : f32
    %cst_7 = arith.constant 7.000000e-02 : f32
    %12 = vector.broadcast %cst_6 : f32 to vector<1x128xf32>
    %13 = arith.maximumf %12, %11 : vector<1x128xf32>
    %14 = vector.broadcast %cst_7 : f32 to vector<1x128xf32>
    %15 = arith.minimumf %14, %13 : vector<1x128xf32>
    %16 = arith.addf %0, %15 : vector<1x128xf32>
    %cst_8 = arith.constant -1.200000e+00 : f32
    %cst_9 = arith.constant 6.000000e-01 : f32
    %17 = vector.broadcast %cst_8 : f32 to vector<1x128xf32>
    %18 = arith.maximumf %17, %16 : vector<1x128xf32>
    %19 = vector.broadcast %cst_9 : f32 to vector<1x128xf32>
    %20 = arith.minimumf %19, %18 : vector<1x128xf32>
    %c0_10 = arith.constant 0 : index
    %c0_11 = arith.constant 0 : index
    %21 = vector.load %arg3[%c0_10, %c0_11] : memref<2x128xf32, #tpu.memory_space<vmem>>, vector<1x128xf32>
    tpu.vector_store %arg3[%c0_10, %c0_11], %20 {strides = array<i32>} : memref<2x128xf32, #tpu.memory_space<vmem>>, vector<1x128xf32>,
    %c1_12 = arith.constant 1 : index
    %c0_13 = arith.constant 0 : index
    %22 = vector.load %arg3[%c1_12, %c0_13] : memref<2x128xf32, #tpu.memory_space<vmem>>, vector<1x128xf32>
    tpu.vector_store %arg3[%c1_12, %c0_13], %15 {strides = array<i32>} : memref<2x128xf32, #tpu.memory_space<vmem>>, vector<1x128xf32>,
    return
  }
  func.func @transform_0(%arg0: i32) -> (i32, i32) {
    %c0_i32 = arith.constant 0 : i32
    %c0_i32_0 = arith.constant 0 : i32
    return %c0_i32, %arg0 : i32, i32
  }
  func.func @transform_1(%arg0: i32) -> (i32, i32) {
    %c0_i32 = arith.constant 0 : i32
    %c0_i32_0 = arith.constant 0 : i32
    return %c0_i32, %arg0 : i32, i32
  }
  func.func @transform_2(%arg0: i32) -> (i32, i32) {
    %c0_i32 = arith.constant 0 : i32
    %c0_i32_0 = arith.constant 0 : i32
    return %c0_i32, %arg0 : i32, i32
  }
}

</mosaic_0001>

<bundles_post_ra>
// kernel: tpu_custom_call.1
= control target key start
LH: loop header
LB: loop body
LE: loop exit
PB: predicated region body
PF: predicated region fallthrough
CT: control target
= control target key end

     0   :  { %7 = vsyncpa [#allocation3], 0  ;;  %s368_s0 = inlined_call_operand.hbm [shape: f32[2,128], index: 0, kind: input, shape index: {}, may-alias: {0,2}]   ;;  %s369_s1 = inlined_call_operand.vmem [shape: f32[1,128], index: 1, kind: input, shape index: {}]   ;;  %s370_s2 = inlined_call_operand.hbm [shape: f32[2,128], index: 2, kind: output, shape index: {}, may-alias: {0,2}]  }
   0x1   :  { %8 = vsyncpa [#allocation4], 0  ;;  %s14_s11 = sshll.u32 %s368_s0, 4  ;;  %s277_s12 = smov [#allocation2]   ;;  %s15_s11 = int_to_ptr.hbm [resolvable:$true] %s14_s11 }
   0x2   :  { %s16_s13 = sshll.u32 %s277_s12, 4  ;;  %s17_s13 = int_to_ptr.vmem [resolvable:$true] %s16_s13 }
   0x3   :  { %19 = dma.hbm_to_vmem [thread:$0]  %s15_s11, 32, %s17_s13, [#allocation3]  }
   0x4   :  { %273 = dma.done.wait [#allocation3], 32  }
   0x5   :  { %274 = vsyncadd [#allocation3], 4294967264  ;;  %v304_v0 = vld [vmem:[#allocation2] sm:$0x1]  ;;  %v278_v13 = vmov 683565275  }
   0x6   :  { %v307_v1 = vmul.f32 3.0, %v304_v0  ;;  %v279_v15 = vmov 2475754826   ;;  %v280_v17 = vmov 2131351028   ;;  %s202_s18 = sshll.u32 %s370_s2, 4  ;;  %s203_s18 = int_to_ptr.hbm [resolvable:$true] %s202_s18 }
   0x7   :  { %v281_v19 = vmov 2102212464   ;;  %v282_v21 = vmov 920167782   ;;  %v283_v27 = vmov 1326507024  }
   0x8   :  { %v35_v2 = vand.u32 2139095040, %v307_v1  ;;  %v32_v4 = vand.u32 2147483647, %v307_v1  ;;  %vm34_vm12 = vcmp.lt.s32.totalorder %v307_v1, 0 }
   0xa   :  { %v36_v3 = vshrl.u32 %v35_v2, 23  ;;  %v39_v7 = vand.u32 8388607, %v32_v4  ;;  %vm351_vm13 = vcmp.le.f32.partialorder %v32_v4, 0.7853982 }
   0xc   :  { %v212_v5 = vadd.s32 4294967169, %v36_v3  ;;  %v40_v10 = vor.u32 8388608, %v39_v7  ;;  %v284_v3 = vmov 0  }
   0xe   :  { %v42_v6 = vadd.s32 1, %v212_v5  ;;  %v316_v29 = vshll.u32 %v40_v10, 8 }
  0x10   :  { %vm43_vm0 = vcmp.gt.s32.totalorder %v42_v6, 0  ;;  %v81_v41 = vand.u32 65535, %v316_v29  ;;  %v82_v42 = vshrl.u32 %v316_v29, 16 }
  0x11   :  { %v44_v8 = vsel %vm43_vm0, %v42_v6, 0 }
  0x12   :  { %v46_v9 = vand.u32 31, %v44_v8  ;;  %v313_v11 = vshrl.u32 %v44_v8, 5 }
  0x14   :  { %v47_v12 = vsub.s32 32, %v46_v9  ;;  %v49_v14 = vshll.u32 %v278_v13, %v46_v9  ;;  %v52_v16 = vshll.u32 %v279_v15, %v46_v9  ;;  %v55_v18 = vshll.u32 %v280_v17, %v46_v9 }
  0x15   :  { %v58_v20 = vshll.u32 %v281_v19, %v46_v9  ;;  %v61_v22 = vshll.u32 %v282_v21, %v46_v9  ;;  %vm64_vm1 = vcmp.lt.s32.totalorder %v313_v11, 1  ;;  %vm67_vm2 = vcmp.lt.s32.totalorder %v313_v11, 4 }
  0x16   :  { %v50_v23 = vshrl.u32 %v279_v15, %v47_v12  ;;  %v53_v24 = vshrl.u32 %v280_v17, %v47_v12  ;;  %v56_v25 = vshrl.u32 %v281_v19, %v47_v12  ;;  %v59_v26 = vshrl.u32 %v282_v21, %v47_v12 }
  0x17   :  { %v62_v28 = vshrl.u32 %v283_v27, %v47_v12  ;;  %vm66_vm3 = vcmp.lt.s32.totalorder %v313_v11, 3  ;;  %vm65_vm4 = vcmp.lt.s32.totalorder %v313_v11, 2  ;;  %v48_v49 = vshrl.u32 %v278_v13, %v47_v12 }
  0x18   :  { %v51_v30 = vor.u32 %v50_v23, %v49_v14  ;;  %v54_v31 = vor.u32 %v53_v24, %v52_v16  ;;  %v57_v32 = vor.u32 %v56_v25, %v55_v18  ;;  %v60_v33 = vor.u32 %v59_v26, %v58_v20 }
  0x19   :  { %v63_v34 = vor.u32 %v62_v28, %v61_v22 }
  0x1a   :  { %v72_v35 = vsel %vm64_vm1, %v51_v30, %v54_v31  ;;  %v76_v36 = vsel %vm64_vm1, %v54_v31, %v57_v32  ;;  %v73_v37 = vsel %vm67_vm2, %v60_v33, 920167782  ;;  %v68_v62 = vsel %vm64_vm1, %v48_v49, %v51_v30 }
  0x1b   :  { %v77_v38 = vsel %vm67_vm2, %v63_v34, 1326507024  ;;  %v74_v39 = vsel %vm66_vm3, %v57_v32, %v73_v37  ;;  %v69_v2 = vsel %vm67_vm2, %v57_v32, 2102212464  ;;  %vm175_vm1 = vweird.f32 %v307_v1 }
  0x1c   :  { %v78_v40 = vsel %vm66_vm3, %v60_v33, %v77_v38  ;;  %v75_v43 = vsel %vm65_vm4, %v72_v35, %v74_v39  ;;  %v70_v14 = vsel %vm66_vm3, %v54_v31, %v69_v2 }
  0x1d   :  { %v79_v44 = vsel %vm65_vm4, %v76_v36, %v78_v40  ;;  %v105_v47 = vand.u32 65535, %v75_v43  ;;  %v106_v48 = vshrl.u32 %v75_v43, 16  ;;  %v71_v22 = vsel %vm65_vm4, %v68_v62, %v70_v14  ;;  %v27_v14 = vld [vmem:[#allocation2 + $0x1] sm:$0x1] }
  0x1e   :  { %v83_v45 = vand.u32 65535, %v79_v44  ;;  %v84_v46 = vshrl.u32 %v79_v44, 16  ;;  %v125_v26 = vmul.u32 %v316_v29, %v71_v22 }
  0x1f   :  { %v107_v53 = vmul.u32 %v105_v47, %v81_v41  ;;  %v108_v54 = vmul.u32 %v106_v48, %v81_v41  ;;  %v109_v55 = vmul.u32 %v105_v47, %v82_v42  ;;  %v110_v59 = vmul.u32 %v106_v48, %v82_v42 }
  0x20   :  { %v85_v50 = vmul.u32 %v83_v45, %v81_v41  ;;  %v86_v51 = vmul.u32 %v84_v46, %v81_v41  ;;  %v87_v52 = vmul.u32 %v83_v45, %v82_v42  ;;  %v88_v56 = vmul.u32 %v84_v46, %v82_v42 }
  0x21   :  { %v111_v60 = vshll.u32 %v108_v54, 16  ;;  %v113_v61 = vshll.u32 %v109_v55, 16  ;;  %v112_v12 = vshrl.u32 %v108_v54, 16  ;;  %v114_v18 = vshrl.u32 %v109_v55, 16 }
  0x22   :  { %v89_v57 = vshll.u32 %v86_v51, 16  ;;  %v91_v58 = vshll.u32 %v87_v52, 16  ;;  %v90_v7 = vshrl.u32 %v86_v51, 16  ;;  %v92_v15 = vshrl.u32 %v87_v52, 16 }
  0x23   :  { %vm115_vm6 = vc.u32 %v107_v53, %v111_v60  ;;  %v117_v6 = vadd.s32 %v111_v60, %v107_v53 }
  0x24   :  { %vm93_vm5 = vc.u32 %v85_v50, %v89_v57  ;;  %v95_v63 = vadd.s32 %v89_v57, %v85_v50  ;;  %v116_v9 = vsel %vm115_vm6, 1, %v284_v3 }
  0x25   :  { %v94_v5 = vsel %vm93_vm5, 1, %v284_v3  ;;  %v118_v13 = vadd.s32 %v116_v9, %v110_v59  ;;  %vm119_vm8 = vc.u32 %v117_v6, %v113_v61  ;;  %v121_v21 = vadd.s32 %v117_v6, %v113_v61 }
  0x26   :  { %v96_v8 = vadd.s32 %v94_v5, %v88_v56  ;;  %vm97_vm7 = vc.u32 %v95_v63, %v91_v58  ;;  %v120_v17 = vsel %vm119_vm8, 1, %v284_v3 }
  0x27   :  { %v98_v10 = vsel %vm97_vm7, 1, %v284_v3  ;;  %v122_v19 = vadd.s32 %v120_v17, %v118_v13 }
  0x28   :  { %v100_v16 = vadd.s32 %v98_v10, %v96_v8 }
  0x29   :  { %v123_v23 = vadd.s32 %v122_v19, %v112_v12 }
  0x2a   :  { %v101_v20 = vadd.s32 %v100_v16, %v90_v7  ;;  %v28_v7 = vld [vmem:[%s369_s1] sm:$0x1]  ;;  %s285_s1 = smov [#allocation5]  }
  0x2b   :  { %v124_v25 = vadd.s32 %v123_v23, %v114_v18  ;;  %v29_v13 = vmul.f32 0.001, %v28_v7  ;;  %s200_s15 = sshll.u32 %s285_s1, 4  ;;  %s201_s15 = int_to_ptr.vmem [resolvable:$true] %s200_s15 }
  0x2c   :  { %v102_v24 = vadd.s32 %v101_v20, %v92_v15 }
  0x2d   :  { %v128_v27 = vadd.s32 1, %v124_v25  ;;  %v30_v18 = vadd.f32 %v29_v13, %v27_v14 }
  0x2e   :  { %vm127_vm9 = vc.u32 %v102_v24, %v121_v21  ;;  %v126_v11 = vadd.s32 %v121_v21, %v102_v24 }
  0x2f   :  { %v129_v28 = vsel %vm127_vm9, %v128_v27, %v124_v25 }
  0x30   :  { %v130_v30 = vadd.s32 %v129_v28, %v125_v26 }
  0x32   :  { %v131_v31 = vadd.s32 536870912, %v130_v30 }
  0x34   :  { %v132_v32 = vshrl.u32 %v131_v31, 30 }
  0x36   :  { %v133_v33 = vshll.u32 %v132_v32, 30  ;;  %v156_v53 = vsub.s32 4, %v132_v32 }
  0x38   :  { %v134_v34 = vsub.s32 %v130_v30, %v133_v33  ;;  %v157_v58 = vsel %vm34_vm12, %v156_v53, %v132_v32 }
  0x39   :  { %v159_v61 = vsel %vm351_vm13, 0, %v157_v58 }
  0x3a   :  { %vm135_vm10 = vcmp.lt.s32.totalorder %v134_v34, 0  ;;  %v136_v35 = vsub.s32 0, %v134_v34  ;;  %v176_v3 = vand.u32 3, %v159_v61 }
  0x3c   :  { %v137_v36 = vsel %vm135_vm10, %v136_v35, %v134_v34  ;;  %vm181_vm14 = vcmp.eq.s32.totalorder %v176_v3, 2  ;;  %vm178_vm15 = vcmp.eq.s32.totalorder %v176_v3, 0  ;;  %vm177_vm0 = vcmp.lt.s32.totalorder %v176_v3, 2 }
  0x3d   :  { %v138_v37 = vclz %v137_v36 }
  0x3f   :  { %v213_v38 = vadd.s32 4294967294, %v138_v37 }
  0x41   :  { %vm214_vm11 = vcmp.lt.s32.totalorder %v213_v38, 0 }
  0x42   :  { %v141_v39 = vsel %vm214_vm11, 0, %v213_v38 }
  0x43   :  { %v142_v40 = vsub.s32 32, %v141_v39  ;;  %v143_v41 = vshll.u32 %v134_v34, %v141_v39  ;;  %v146_v42 = vsub.s32 4294967266, %v141_v39 }
  0x45   :  { %v144_v29 = vshrl.u32 %v126_v11, %v142_v40  ;;  %v147_v43 = vadd.s32 127, %v146_v42 }
  0x47   :  { %v145_v44 = vor.u32 %v144_v29, %v143_v41  ;;  %v148_v45 = vshll.u32 %v147_v43, 23 }
  0x49   :  { %v149_v46 = vor.u32 4788187, %v148_v45  ;;  %v152_v47 = vcvt.s32.f32 %v145_v44 }
  0x4b   :  { %v150_v48 = vand.u32 2147483647, %v149_v46 }
  0x4d   :  { %v153_v49 = vmul.f32 %v152_v47, %v150_v48 }
  0x4f   :  { %v154_v51 = vxor.u32 2147483648, %v153_v49 }
  0x51   :  { %v155_v52 = vsel %vm34_vm12, %v154_v51, %v153_v49 }
  0x52   :  { %v158_v54 = vsel %vm351_vm13, %v307_v1, %v155_v52 }
  0x53   :  { %v160_v55 = vmul.f32 %v158_v54, %v158_v54 }
  0x55   :  { %v161_v56 = vmul.f32 -0.001358992, %v160_v55  ;;  %v168_v57 = vmul.f32 -0.00019511016, %v160_v55 }
  0x57   :  { %v162_v59 = vadd.f32 0.041655596, %v161_v56  ;;  %v169_v60 = vadd.f32 0.008332121, %v168_v57 }
  0x59   :  { %v163_v4 = vmul.f32 %v162_v59, %v160_v55  ;;  %v170_v62 = vmul.f32 %v169_v60, %v160_v55 }
  0x5b   :  { %v164_v63 = vadd.f32 -0.4999988, %v163_v4  ;;  %v171_v2 = vadd.f32 -0.16666654, %v170_v62 }
  0x5d   :  { %v165_v5 = vmul.f32 %v164_v63, %v160_v55  ;;  %v172_v6 = vmul.f32 %v171_v2, %v160_v55 }
  0x5f   :  { %v166_v8 = vadd.f32 1.0, %v165_v5  ;;  %v173_v9 = vadd.f32 1.0, %v172_v6 }
  0x61   :  { %v174_v10 = vmul.f32 %v173_v9, %v158_v54  ;;  %v182_v12 = vxor.u32 2147483648, %v166_v8 }
  0x63   :  { %v179_v15 = vxor.u32 2147483648, %v174_v10  ;;  %v183_v16 = vsel %vm181_vm14, %v182_v12, %v174_v10 }
  0x65   :  { %v180_v17 = vsel %vm178_vm15, %v166_v8, %v179_v15 }
  0x66   :  { %v184_v19 = vsel %vm177_vm0, %v180_v17, %v183_v16 }
  0x67   :  { %v185_v20 = vsel %vm175_vm1, nan, %v184_v19 }
  0x68   :  { %v186_v21 = vmul.f32 -0.0025, %v185_v20 }
  0x6a   :  { %v187_v22 = vadd.f32 %v186_v21, %v30_v18 }
  0x6c   :  { %v215_v23 = vclamps-f32 %v187_v22, 0.07 }
  0x6e   :  { %v190_v24 = vadd.f32 %v215_v23, %v304_v0  ;;  %194 = vst [vmem:[#allocation5 + $0x1] sm:$0x1] %v215_v23 }
  0x70   :  { %v191_v25 = vmax.f32 %v190_v24, -1.2 }
  0x72   :  { %v192_v26 = vmin.f32 %v191_v25, 0.6 }
  0x74   :  { %193 = vst [vmem:[#allocation5] sm:$0x1] %v192_v26 }
  0x75   :  { %205 = dma.vmem_to_hbm [thread:$0]  %s201_s15, 32, %s203_s18, [#allocation4]  }
  0x76   :  { %275 = dma.done.wait [#allocation4], 32  }
  0x77   :  { %276 = vsyncadd [#allocation4], 4294967264 }
  0x78   :  { %210 = vsyncpa [#allocation3], 1 }
  0x79   :  { %211 = vsyncpa [#allocation4], 1 }

</bundles_post_ra>
